<compile_context>
chip_gen: v7x
topology: tpu7x:2x2x1
jax: 0.10.0
libtpu: 0.0.40
codegen_flags: <defaults>
</compile_context>

<pallas_src>
import jax
import jax.numpy as jnp
from jax.experimental import pallas as pl
from jax.experimental.pallas import tpu as pltpu


def _round_up(x, m):
    return (x + m - 1) // m * m


# ----------------------------------------------------------------------------
# Pallas kernel: fused (im2col-matmul conv) + bias + BN + ReLU + act fake-quant
# ----------------------------------------------------------------------------
def _qwrapper_kernel(p_ref, w_ref, ss_ref, o_ref):
    # p_ref:  (TM, Kp)   bf16 im2col patch tile
    # w_ref:  (Kp, TOC)  bf16 integer weight quant levels (exact, |q| <= 127)
    # ss_ref: (2, TOC)   f32  row 0 = folded scale, row 1 = folded shift
    # o_ref:  (TM, TOC)  int8 activation quant levels in [0, 127]
    acc = jnp.dot(p_ref[...], w_ref[...], preferred_element_type=jnp.float32)
    scale = ss_ref[0:1, :]
    shift = ss_ref[1:2, :]
    a = acc * scale + shift                  # conv-bias + BN, in act-quant units
    # ReLU + symmetric int8 activation fake-quant fused: clip(round(.), 0, 127).
    # Dequantization (* act_scale) happens in the wrapper on the int8 levels so
    # the kernel writes 1 byte/element.  Epilogue kept in f32 for exactness
    # (and v5e has no bf16 VPU).
    o_ref[...] = jnp.clip(jnp.round(a), 0.0, 127.0).astype(jnp.int8)


# ----------------------------------------------------------------------------
# Plain-JAX glue
# ----------------------------------------------------------------------------
def _fake_quant_weight(w):
    """Symmetric per-tensor int8 fake quantization (dequantized), for the reference."""
    scale = jnp.maximum(jnp.max(jnp.abs(w)), 1e-8) / 127.0
    return jnp.clip(jnp.round(w / scale), -127.0, 127.0) * scale


def _im2col_nchw(x, kh, kw, pad):
    """x: (N, C, H, W) -> patches (N*OH*OW, C*kh*kw), matching OIHW weight flatten."""
    n, c, h, w = x.shape
    oh, ow = h + 2 * pad - kh + 1, w + 2 * pad - kw + 1
    xp = jnp.pad(x, ((0, 0), (0, 0), (pad, pad), (pad, pad)))
    cols = []
    for i in range(kh):
        for j in range(kw):
            cols.append(xp[:, :, i:i + oh, j:j + ow])       # (N, C, OH, OW)
    patches = jnp.stack(cols, axis=2)                       # (N, C, kh*kw, OH, OW)
    patches = patches.transpose(0, 3, 4, 1, 2)              # (N, OH, OW, C, kh*kw)
    return patches.reshape(n * oh * ow, c * kh * kw), oh, ow


def qwrapper_forward(x, weight, bias, gamma, beta, running_mean, running_var,
                     *, act_scale=0.05, eps=1e-5, tm=1024):
    """QWrapper.forward in QUANT_EVAL mode.  x: NCHW f32, weight: OIHW f32."""
    n, c, h, w = x.shape
    oc, _, kh, kw = weight.shape
    pad = 1                                                  # conv padding=1, stride=1

    # --- weight fake-quant: keep integer levels (exact in bf16), fold scale out ---
    w_scale = jnp.maximum(jnp.max(jnp.abs(weight)), 1e-8) / 127.0
    w_levels = jnp.clip(jnp.round(weight / w_scale), -127.0, 127.0)

    k = c * kh * kw
    kp = _round_up(k, 128)                                   # lane-dense contraction dim
    ocp = _round_up(oc, 128)                                 # lane-dense output channels
    w_mat = w_levels.reshape(oc, k).T.astype(jnp.bfloat16)   # (K, OC)
    w_mat = jnp.pad(w_mat, ((0, kp - k), (0, ocp - oc)))     # (Kp, OCp)

    # --- fold conv bias + BN + weight scale + 1/act_scale into one per-channel
    #     affine, carried as a single (2, OCp) f32 input --------------------------
    bn_scale = gamma / jnp.sqrt(running_var + eps)
    inv_act = 1.0 / act_scale
    scale = (bn_scale * w_scale * inv_act).astype(jnp.float32)                       # (OC,)
    shift = (((bias - running_mean) * bn_scale + beta) * inv_act).astype(jnp.float32)
    scale_shift = jnp.stack([scale, shift], axis=0)                                   # (2, OC)
    scale_shift = jnp.pad(scale_shift, ((0, 0), (0, ocp - oc)))                       # (2, OCp)

    # --- OC tile: lane-dense 128-multiple blocks; tiled so large OC still fits
    #     v7x's 64 MiB VMEM (demo shapes -> a single OC tile) ---------------------
    d = ocp // 128
    toc = 128 * next(cand for cand in (4, 2, 1) if cand <= d and d % cand == 0)

    # --- M tile: guarantee >= 2 grid steps when M allows it ("parallel" only
    #     uses v7x's 2 TensorCores with >= 2 steps), keep per-step VMEM <~20 MiB --
    m = n * (h + 2 * pad - kh + 1) * (w + 2 * pad - kw + 1)
    tm = max(256, min(tm, _round_up(-(-m // 2), 256)))
    while tm > 256 and (2 * tm * kp * 2 + 2 * tm * toc + 2 * kp * toc * 2) > 20 * 1024 * 1024:
        tm //= 2
    mp = _round_up(m, tm)

    # --- im2col in bf16 (cast BEFORE building the amplified intermediate) --------
    # TODO(synk): build the patch block in-kernel from halo'd NHWC input rows to
    # remove the im2col HBM read amplification entirely.
    patches, oh, ow = _im2col_nchw(x.astype(jnp.bfloat16), kh, kw, pad)   # (M, K) bf16
    patches = jnp.pad(patches, ((0, mp - m), (0, kp - k)))                # (Mp, Kp)

    grid = (mp // tm, ocp // toc)
    cost = pl.CostEstimate(
        flops=2 * mp * kp * ocp,
        transcendentals=0,
        bytes_accessed=(mp * kp * 2 + grid[0] * kp * ocp * 2
                        + 2 * ocp * 4 + mp * ocp * 1))

    out_flat = pl.pallas_call(
        _qwrapper_kernel,
        out_shape=jax.ShapeDtypeStruct((mp, ocp), jnp.int8),
        grid_spec=pltpu.PrefetchScalarGridSpec(
            num_scalar_prefetch=0,
            grid=grid,
            in_specs=[
                pl.BlockSpec((tm, kp), lambda i, j: (i, 0)),      # patch tile
                pl.BlockSpec((kp, toc), lambda i, j: (0, j)),     # weight levels
                pl.BlockSpec((2, toc), lambda i, j: (0, j)),      # folded scale/shift
            ],
            out_specs=pl.BlockSpec((tm, toc), lambda i, j: (i, j)),
        ),
        compiler_params=pltpu.CompilerParams(
            dimension_semantics=("parallel", "parallel"),         # shards over v7x's 2 TCs
            vmem_limit_bytes=32 * 1024 * 1024),                   # v5e scoped default is 16 MiB
        cost_estimate=cost,
    )(patches, w_mat, scale_shift)

    # int8 quant levels -> strip padding -> NCHW transpose on int8 (4x cheaper
    # than f32) -> dequantize last.  A consumer that accepts NHWC (or int8
    # levels + scale) can skip the transpose / dequant entirely.
    q = out_flat[:m, :oc].reshape(n, oh, ow, oc).transpose(0, 3, 1, 2)
    return q.astype(jnp.float32) * act_scale


# ----------------------------------------------------------------------------
# Pure-JAX reference (original unfused f32 math) for a sanity check
# ----------------------------------------------------------------------------
def _reference_forward(x, weight, bias, gamma, beta, running_mean, running_var,
                       *, act_scale=0.05, eps=1e-5):
    c, kh, kw = weight.shape[1], weight.shape[2], weight.shape[3]
    oc = weight.shape[0]
    q_weight = _fake_quant_weight(weight)
    patches, oh, ow = _im2col_nchw(x, kh, kw, 1)
    conv = patches @ q_weight.reshape(oc, c * kh * kw).T
    s = gamma / jnp.sqrt(running_var + eps)
    a = conv * s[None, :] + ((bias - running_mean) * s + beta)[None, :]
    a = jnp.maximum(a, 0.0)
    a = jnp.clip(jnp.round(a / act_scale), -128.0, 127.0) * act_scale
    n = x.shape[0]
    return a.reshape(n, oh, ow, oc).transpose(0, 3, 1, 2)


if __name__ == "__main__":
    key = jax.random.PRNGKey(0)
    kx, kw_, kb, kg, kbeta, kmean, kvar = jax.random.split(key, 7)

    N, C, H, W = 2, 4, 16, 16
    OC, KH, KW = 8, 3, 3
    ACT_SCALE = 0.05

    x = jax.random.normal(kx, (N, C, H, W), dtype=jnp.float32)
    weight = jax.random.normal(kw_, (OC, C, KH, KW), dtype=jnp.float32) * 0.1
    bias = jax.random.normal(kb, (OC,), dtype=jnp.float32) * 0.1
    gamma = 1.0 + 0.1 * jax.random.normal(kg, (OC,), dtype=jnp.float32)
    beta = 0.1 * jax.random.normal(kbeta, (OC,), dtype=jnp.float32)
    running_mean = 0.1 * jax.random.normal(kmean, (OC,), dtype=jnp.float32)
    running_var = jnp.abs(jax.random.normal(kvar, (OC,), dtype=jnp.float32)) + 0.5

    # M = 512 here, so the adaptive tm picks 256 -> a 2-step parallel grid.
    out = qwrapper_forward(x, weight, bias, gamma, beta, running_mean, running_var,
                           act_scale=ACT_SCALE)
    out = jax.block_until_ready(out)

    ref = _reference_forward(x, weight, bias, gamma, beta, running_mean, running_var,
                             act_scale=ACT_SCALE)
    # tolerance: bf16 patch rounding / MXU accumulation order may flip at most
    # one activation quant bucket near a rounding boundary
    assert out.shape == (N, OC, H, W)
    assert jnp.max(jnp.abs(out - ref)) <= ACT_SCALE + 1e-3

    print("KERNEL_OK")
</pallas_src>

<mosaic_0001>
module attributes {stable_mosaic.version = 11 : i64} {
  func.func @_qwrapper_kernel(%arg0: i32, %arg1: i32, %arg2: memref<256x128xbf16, #tpu.memory_space<vmem>>, %arg3: memref<128x128xbf16, #tpu.memory_space<vmem>>, %arg4: memref<2x128xf32, #tpu.memory_space<vmem>>, %arg5: memref<256x128xi8, #tpu.memory_space<vmem>>) attributes {dimension_semantics = [#tpu.dimension_semantics<parallel>, #tpu.dimension_semantics<parallel>], iteration_bounds = array<i64: 2, 1>, scalar_prefetch = 0 : i64, scratch_operands = 0 : i64, tpu.core_type = #tpu.core_type<tc>, window_params = [{transform_indices = @transform_0, window_bounds = array<i64: 256, 128>}, {transform_indices = @transform_1, window_bounds = array<i64: 128, 128>}, {transform_indices = @transform_2, window_bounds = array<i64: 2, 128>}, {transform_indices = @transform_3, window_bounds = array<i64: 256, 128>}]} {
    %c0 = arith.constant 0 : index
    %c0_0 = arith.constant 0 : index
    %0 = vector.load %arg2[%c0, %c0_0] : memref<256x128xbf16, #tpu.memory_space<vmem>>, vector<256x128xbf16>
    %c0_1 = arith.constant 0 : index
    %c0_2 = arith.constant 0 : index
    %1 = vector.load %arg3[%c0_1, %c0_2] : memref<128x128xbf16, #tpu.memory_space<vmem>>, vector<128x128xbf16>
    %cst = arith.constant dense<0.000000e+00> : vector<256x128xf32>
    %2 = tpu.matmul %0, %1, %cst {dimension_numbers = #tpu.dot_dimension_numbers<[1], [0], [0], [1], [0, 0, 1, 1], [], []>} : vector<256x128xbf16>, vector<128x128xbf16>, vector<256x128xf32> -> vector<256x128xf32>
    %c0_3 = arith.constant 0 : index
    %c0_4 = arith.constant 0 : index
    %3 = vector.load %arg4[%c0_3, %c0_4] : memref<2x128xf32, #tpu.memory_space<vmem>>, vector<1x128xf32>
    %c1 = arith.constant 1 : index
    %c0_5 = arith.constant 0 : index
    %4 = vector.load %arg4[%c1, %c0_5] : memref<2x128xf32, #tpu.memory_space<vmem>>, vector<1x128xf32>
    %5 = vector.broadcast %3 : vector<1x128xf32> to vector<256x128xf32>
    %6 = arith.mulf %2, %5 : vector<256x128xf32>
    %7 = vector.broadcast %4 : vector<1x128xf32> to vector<256x128xf32>
    %8 = arith.addf %6, %7 : vector<256x128xf32>
    %9 = math.roundeven %8 : vector<256x128xf32>
    %cst_6 = arith.constant 0.000000e+00 : f32
    %cst_7 = arith.constant 1.270000e+02 : f32
    %10 = vector.broadcast %cst_6 : f32 to vector<256x128xf32>
    %11 = arith.maximumf %10, %9 : vector<256x128xf32>
    %12 = vector.broadcast %cst_7 : f32 to vector<256x128xf32>
    %13 = arith.minimumf %12, %11 : vector<256x128xf32>
    %14 = arith.fptosi %13 : vector<256x128xf32> to vector<256x128xi8>
    %c0_8 = arith.constant 0 : index
    %c0_9 = arith.constant 0 : index
    %15 = vector.load %arg5[%c0_8, %c0_9] : memref<256x128xi8, #tpu.memory_space<vmem>>, vector<256x128xi8>
    tpu.vector_store %arg5[%c0_8, %c0_9], %14 {strides = array<i32>} : memref<256x128xi8, #tpu.memory_space<vmem>>, vector<256x128xi8>,
    return
  }
  func.func @transform_0(%arg0: i32, %arg1: i32) -> (i32, i32) {
    %c0_i32 = arith.constant 0 : i32
    %c0_i32_0 = arith.constant 0 : i32
    return %arg0, %c0_i32 : i32, i32
  }
  func.func @transform_1(%arg0: i32, %arg1: i32) -> (i32, i32) {
    %c0_i32 = arith.constant 0 : i32
    %c0_i32_0 = arith.constant 0 : i32
    return %c0_i32, %arg1 : i32, i32
  }
  func.func @transform_2(%arg0: i32, %arg1: i32) -> (i32, i32) {
    %c0_i32 = arith.constant 0 : i32
    %c0_i32_0 = arith.constant 0 : i32
    return %c0_i32, %arg1 : i32, i32
  }
  func.func @transform_3(%arg0: i32, %arg1: i32) -> (i32, i32) {
    %c0_i32 = arith.constant 0 : i32
    return %arg0, %arg1 : i32, i32
  }
}

</mosaic_0001>

<bundles_post_ra>
// kernel: tpu_custom_call.1
= control target key start
LH: loop header
LB: loop body
LE: loop exit
PB: predicated region body
PF: predicated region fallthrough
CT: control target
= control target key end

     0   :  { %8 = vsyncpa [#allocation3], 0  ;;  %s1808_s0 = inlined_call_operand.hbm [shape: bf16[512,128], index: 0, kind: input, shape index: {}]   ;;  %s1809_s1 = inlined_call_operand.hbm [shape: bf16[128,128], index: 1, kind: input, shape index: {}]   ;;  %s1810_s2 = inlined_call_operand.vmem [shape: f32[2,128], index: 2, kind: input, shape index: {}]   ;;  %s1811_s3 = inlined_call_operand.hbm [shape: s8[512,128], index: 3, kind: output, shape index: {}]  }
   0x1   :  { %10 = vsyncpa [#allocation3 + $0x1], 0 }
   0x2   :  { %11 = vsyncpa [#allocation6], 0 }
   0x3   :  { %12 = vsyncpa [#allocation4], 0 }
   0x4   :  { %14 = vsyncpa [#allocation4 + $0x1], 0  ;;  %s1453_s12 = smov 0   ;;  %s1455_s13 = smov 0  }
   0x5   :  { %s1457_s14 = smov 0   ;;  %s1459_s15 = smov 0  }
   0x6   :  { %s1461_s16 = smov 0   ;;  %s1463_s17 = smov 0  }
   0x7 LB: > { %s1013_s18 = sadd.s32 4294967295, %s1424_s17   ;;  %s1014_s19 = sadd.s32 4294967294, %s1424_s17   ;;  %s1424_s17 = sphi %s1463_s17, %s20_s17   ;;  %s1420_s16 = sphi %s1461_s16, %s1835_s16   ;;  %s1416_s15 = sphi %s1459_s15, %s1834_s15   ;;  %s1412_s14 = sphi %s1457_s14, %s1833_s14   ;;  %s1408_s13 = sphi %s1455_s13, %s1832_s13   ;;  %s1404_s12 = sphi %s1453_s12, %s1831_s12  }
   0x8   : > { %p52_p0 = scmp.ne.s32.totalorder %s1408_s13, %s1404_s12  ;;  %p1487_p1 = scmp.eq.s32.totalorder %s1013_s18, 0 }
   0x9   : > { %p1491_p2 = scmp.eq.s32.totalorder %s1013_s18, 1  ;;  %p136_p3 = scmp.eq.s32.totalorder %s1014_s19, 1 }
   0xa   : > { %s1816_s20 = scalar_select %p1487_p1, 1, 0 }
   0xb   : > { %s1817_s21 = scalar_select %p1491_p2, 1, 0 }
   0xc   : > { %p1497_p4 = por %p1487_p1, %p52_p0  ;;  %p1015_p5 = scmp.ge.s32.totalorder %s1424_s17, 1 }
   0xd   : > { %p1502_p6 = por %p136_p3, %p52_p0  ;;  %p143_p7 = scmp.lt.s32.totalorder %s1424_s17, 3 }
   0xe   : > { %s1818_s22 = scalar_select %p1497_p4, 1, 0 }
   0xf   : > { %s1819_s23 = scalar_select %p1502_p6, 1, 0 }
  0x10   : > { %p1507_p8 = pnand %p1015_p5, %p143_p7  ;;  %s1426_s25 = smov [#allocation5]  }
  0x11   : > { %s157_s26 = sshll.u32 %s1426_s25, 4  ;;  %s32_s28 = sadd.s32 1, %s1420_s16  ;;  %s158_s26 = int_to_ptr.vmem [resolvable:$true] %s157_s26 }
  0x12   : > { %s1820_s24 = scalar_select %p1507_p8, 1, 0 }
  0x13   : > { %p1187_p9 = pneg %p1507_p8  ;;  %s1280_s4 = scalar_lea.hbm %s1809_s1, 1024 }
  0x14   : > { %p1281_p12 = scmp.ne.s32.totalorder %s1809_s1, %s1280_s4  ;;  %p1287_p5 = scmp.lt.u32.totalorder %s1280_s4, %s1809_s1 }
  0x15   : > { %p1516_p11 = pnand %p1187_p9, %p1487_p1 }
  0x17   : > { %p1282_p13 = pneg %p1516_p11 }
  0x19   : > { %p1283_p0 = pnand %p1282_p13, %p1281_p12 }
  0x1b   : > { %p1284_p3 = pneg %p1283_p0 }
  0x1d   : > { %p1289_p7 = pnand %p1287_p5, %p1284_p3 }
  0x1f   : > { %1292 = shalt.err (!%p1289_p7)
}
  0x20   : > { %s1293_s9 = scalar_lea.vmem %s158_s26, 1024  ;;  %p1301_p1 = scmp.lt.s32.totalorder %s158_s26, %s158_s26 }
  0x21   : > { %p1294_p9 = scmp.ne.s32.totalorder %s158_s26, %s1293_s9  ;;  %p1302_p4 = scmp.lt.s32.totalorder %s1293_s9, %s1293_s9 }
  0x23   : > { %p1296_p10 = pnand %p1294_p9, %p1282_p13  ;;  %p1303_p8 = por %p1302_p4, %p1301_p1 }
  0x25   : > { %p1297_p6 = pneg %p1296_p10 }
  0x27   : > { %p1304_p2 = pnand %p1303_p8, %p1297_p6 }
  0x29   : > { %1307 = shalt.err (!%p1304_p2)
}
  0x2a   : > { %s1427_s10 = smov 64   ;;  %s1428_s11 = smov 4  }
  0x2b   : > { %1190 = dma.hbm_to_vmem [thread:$0]  (!%p1516_p11), %s1809_s1, 1024, %s158_s26, [#allocation6], %s1427_s10, %s1427_s10, %s1428_s11  }
  0x2c   : > { %p34_p1 = scmp.ge.s32.totalorder %s32_s28, 2  ;;  %s39_s25 = sadd.s32 1, %s1412_s14 }
  0x2d   : > { %p46_p2 = scmp.ne.s32.totalorder %s1412_s14, %s1408_s13  ;;  %p47_p4 = scmp.eq.s32.totalorder %s1424_s17, 0 }
  0x2e   : > { %s1837_s28 = smov (%p34_p1, %s32_s28), 0  ;;  %p1823_p8 = scmp.ne.s32.totalorder %s1817_s21, 0 }
  0x2f   : > { %p1546_p6 = por %p47_p4, %p46_p2  ;;  %s36_s30 = ssub.s32 %s1420_s16, %s1837_s28 }
  0x30   : > { %p1552_p10 = por %p1823_p8, %p46_p2  ;;  %p1200_p12 = scmp.lt.s32.totalorder %s1424_s17, 2 }
  0x31   : > { %p37_p11 = scmp.eq.s32.totalorder %s36_s30, 0  ;;  %s178_s26 = sand.u32 1, %s1412_s14  }
  0x32   : > { %s1019_s4 = sshll.u32 %s178_s26, 7  ;;  %s1057_s6 = sshll.u32 %s1420_s16, 11 }
  0x33   : > { %s1561_s5 = scalar_select %p37_p11, %s1412_s14, %s39_s25  }
  0x34   : > { %s1567_s9 = scalar_lea.hbm %s1808_s0, %s1057_s6  ;;  %s182_s21 = scalar_lea.vmem [#allocation2], %s1019_s4 }
  0x35   : > { %s189_s18 = sshll.u32 %s182_s21, 4  ;;  %p1573_p13 = pnand %p1200_p12, %p1546_p6  ;;  %s1569_s18 = int_to_ptr.vmem [resolvable:$true] %s189_s18 }
  0x36   : > { %s1577_s25 = scalar_lea.sflag [#allocation3], %s178_s26  ;;  %s1308_s30 = scalar_lea.hbm %s1567_s9, 2048 }
  0x37   : > { %p1309_p0 = scmp.ne.s32.totalorder %s1567_s9, %s1308_s30  ;;  %p1310_p3 = pneg %p1573_p13 }
  0x38   : > { %s1313_s29 = scalar_lea.hbm %s1808_s0, 4096  ;;  %p1314_p9 = scmp.lt.u32.totalorder %s1567_s9, %s1808_s0 }
  0x39   : > { %p1311_p5 = pnand %p1310_p3, %p1309_p0  ;;  %p1315_p1 = scmp.lt.u32.totalorder %s1313_s29, %s1308_s30 }
  0x3a   : > { %p1317_p4 = scmp.lt.u32.totalorder %s1308_s30, %s1567_s9 }
  0x3b   : > { %p1312_p7 = pneg %p1311_p5  ;;  %p1316_p2 = por %p1315_p1, %p1314_p9 }
  0x3d   : > { %p1318_p6 = por %p1317_p4, %p1316_p2 }
  0x3f   : > { %p1319_p8 = pnand %p1318_p6, %p1312_p7 }
  0x41   : > { %1322 = shalt.err (!%p1319_p8)
}
  0x42   : > { %s1323_s26 = scalar_lea.vmem %s1569_s18, 2048  ;;  %s1429_s21 = smov [#allocation2]  }
  0x43   : > { %p1324_p12 = scmp.ne.s32.totalorder %s1569_s18, %s1323_s26  ;;  %s1328_s4 = sshll.u32 %s1429_s21, 4  ;;  %s1329_s4 = int_to_ptr.vmem [resolvable:$false] %s1328_s4 }
  0x44   : > { %s1330_s6 = scalar_lea.vmem %s1329_s4, 4096  ;;  %p1331_p5 = scmp.lt.s32.totalorder %s1569_s18, %s1329_s4 }
  0x45   : > { %p1326_p11 = pnand %p1324_p12, %p1310_p3  ;;  %p1332_p9 = scmp.lt.s32.totalorder %s1330_s6, %s1323_s26 }
  0x47   : > { %p1327_p0 = pneg %p1326_p11  ;;  %p1333_p1 = por %p1332_p9, %p1331_p5 }
  0x49   : > { %p1334_p2 = pnand %p1333_p1, %p1327_p0 }
  0x4b   : > { %1337 = shalt.err (!%p1334_p2)
}
  0x4c   : > { %1194 = dma.hbm_to_vmem [thread:$0]  (!%p1573_p13), %s1567_s9, 2048, %s1569_s18, %s1577_s25, %s1427_s10, %s1427_s10, %s1428_s11  }
  0x4d   : > { %p1826_p3 = scmp.ne.s32.totalorder %s1820_s24, 0 }
  0x4e   : > { %s1611_s30 = sand.u32 (!%p1826_p3), 1, %s1408_s13   ;;  %p1827_p7 = scmp.ne.s32.totalorder (!%p1826_p3), %s1818_s22, 0 }
  0x4f   : > { %201 = sbr.rel (%p1826_p3) target bundleno = 411 (0x19b), region = 32  ;;  %s1023_s29 = sshll.u32 (!%p1826_p3), %s1611_s30, 7 }
  0x50   : > { %s204_s7 = scalar_lea.sflag (!%p1826_p3), [#allocation3], %s1611_s30  ;;  %s1615_s8 = scalar_lea.vmem (!%p1826_p3), [#allocation2], %s1023_s29 }
  0x56   : > { %1391 = dma.done.wait (%p1827_p7), %s204_s7, 2048  }
  0x57   : > { %1393 = vsyncadd (%p1827_p7), %s204_s7, 4294965248  ;;  %p1828_p13 = scmp.ne.s32.totalorder %s1816_s20, 0 }
  0x59   : > { %1395 = dma.done.wait (%p1828_p13), [#allocation6], 1024  }
  0x5a   : > { %1397 = vsyncadd (%p1828_p13), [#allocation6], 4294966272  ;;  %v1256_v0 = vld [vmem:[#allocation5] sm:$0xff]   ;;  %v1257_v1 = vld [vmem:[#allocation5 + $0x8] sm:$0xff]   ;;  %s1025_s11 = sshll.u32 %s1611_s30, 6  ;;  %s1058_s18 = sshll.u32 %s1416_s15, 10 }
  0x5b   : > { %1083 = vmatprep.subr.bf16.mxu0 %v1256_v0  ;;  %1131 = vmatprep.subr.bf16.mxu1 %v1256_v0  ;;  %v1258_v2 = vld [vmem:[#allocation5 + $0x10] sm:$0xff]   ;;  %v1259_v3 = vld [vmem:[#allocation5 + $0x18] sm:$0xff]   ;;  %v1264_v4 = vld [vmem:[%s1615_s8] sm:$0xff]   ;;  %s1690_s9 = scalar_lea.vmem [#allocation7], %s1025_s11  ;;  %s1755_s21 = scalar_lea.hbm %s1811_s3, %s1058_s18 }
  0x5c   : > { %1084 = vmatpush3.bf16.msra.mxu0 %v1256_v0  ;;  %1139 = vmatpush3.bf16.msra.mxu1 %v1256_v0  ;;  %v1265_v5 = vld [vmem:[%s1615_s8 + $0x40] sm:$0xff]   ;;  %v1261_v7 = vld [vmem:[#allocation5 + $0x28] sm:$0xff]   ;;  %v1262_v8 = vld [vmem:[#allocation5 + $0x30] sm:$0xff]   ;;  %s903_s19 = sshll.u32 %s1690_s9, 4  ;;  %s889_s4 = scalar_lea.sflag [#allocation4], %s1611_s30  ;;  %s1757_s19 = int_to_ptr.vmem [resolvable:$true] %s903_s19 }
  0x5d   : > { %1085 = vmatprep.subr.bf16.mxu0 %v1257_v1  ;;  %1132 = vmatprep.subr.bf16.mxu1 %v1257_v1  ;;  %v1260_v6 = vld [vmem:[#allocation5 + $0x20] sm:$0xff]   ;;  %v1263_v9 = vld [vmem:[#allocation5 + $0x38] sm:$0xff]   ;;  %v1266_v10 = vld [vmem:[%s1615_s8 + $0x8] sm:$0xff]   ;;  %s1338_s6 = scalar_lea.vmem %s1757_s19, 1024  ;;  %s1430_s15 = smov [#allocation7]  }
  0x5e   : > { %1099 = vmatprep.mubr.bf16.mxu0 %v1264_v4  ;;  %1115 = vmatprep.mubr.bf16.mxu1 %v1265_v5  ;;  %v1267_v11 = vld [vmem:[%s1615_s8 + $0x48] sm:$0xff]   ;;  %v1268_v12 = vld [vmem:[%s1615_s8 + $0x10] sm:$0xff]   ;;  %v1270_v14 = vld [vmem:[%s1615_s8 + $0x18] sm:$0xff]   ;;  %p1339_p4 = scmp.ne.s32.totalorder %s1757_s19, %s1338_s6  ;;  %s1342_s29 = sshll.u32 %s1430_s15, 4  ;;  %s1343_s29 = int_to_ptr.vmem [resolvable:$false] %s1342_s29 }
  0x5f   : > { %v1269_v13 = vld [vmem:[%s1615_s8 + $0x50] sm:$0xff]   ;;  %v1271_v15 = vld [vmem:[%s1615_s8 + $0x58] sm:$0xff]   ;;  %v1272_v16 = vld [vmem:[%s1615_s8 + $0x20] sm:$0xff]   ;;  %s1344_s7 = scalar_lea.vmem %s1343_s29, 2048  ;;  %p1345_p12 = scmp.lt.s32.totalorder %s1757_s19, %s1343_s29 }
  0x60   : > { %1086 = vmatpush3.bf16.msra.mxu0 %v1257_v1  ;;  %1140 = vmatpush3.bf16.msra.mxu1 %v1257_v1  ;;  %v1273_v17 = vld [vmem:[%s1615_s8 + $0x60] sm:$0xff]   ;;  %v1274_v18 = vld [vmem:[%s1615_s8 + $0x28] sm:$0xff]   ;;  %v1276_v20 = vld [vmem:[%s1615_s8 + $0x30] sm:$0xff]   ;;  %p1340_p6 = pnand %p1339_p4, %p1552_p10  ;;  %p1346_p11 = scmp.lt.s32.totalorder %s1344_s7, %s1338_s6 }
  0x61   : > { %1087 = vmatprep.subr.bf16.mxu0 %v1258_v2  ;;  %1133 = vmatprep.subr.bf16.mxu1 %v1258_v2  ;;  %v1275_v19 = vld [vmem:[%s1615_s8 + $0x68] sm:$0xff]   ;;  %v1277_v21 = vld [vmem:[%s1615_s8 + $0x70] sm:$0xff]   ;;  %v1278_v22 = vld [vmem:[%s1615_s8 + $0x38] sm:$0xff]  }
  0x62   : > { %v1279_v23 = vld [vmem:[%s1615_s8 + $0x78] sm:$0xff]   ;;  %v1644_v24 = vld [vmem:[%s1810_s2] ss:$0 sm:$0xff]  ;;  %v1649_v26 = vld [vmem:[%s1810_s2 + $0x1] ss:$0 sm:$0xff]  ;;  %p1341_p8 = pneg %p1340_p6  ;;  %p1347_p0 = por %p1346_p11, %p1345_p12 }
  0x64   : > { %1088 = vmatpush3.bf16.msra.mxu0 %v1258_v2  ;;  %1141 = vmatpush3.bf16.msra.mxu1 %v1258_v2  ;;  %p1348_p5 = pnand %p1347_p0, %p1341_p8 }
  0x65   : > { %1089 = vmatprep.subr.bf16.mxu0 %v1259_v3  ;;  %1134 = vmatprep.subr.bf16.mxu1 %v1259_v3 }
  0x68   : > { %1090 = vmatpush3.bf16.msra.mxu0 %v1259_v3  ;;  %1142 = vmatpush3.bf16.msra.mxu1 %v1259_v3 }
  0x69   : > { %1091 = vmatprep.subr.bf16.mxu0 %v1260_v6  ;;  %1135 = vmatprep.subr.bf16.mxu1 %v1260_v6 }
  0x6c   : > { %1092 = vmatpush3.bf16.msra.mxu0 %v1260_v6  ;;  %1143 = vmatpush3.bf16.msra.mxu1 %v1260_v6 }
  0x6d   : > { %1093 = vmatprep.subr.bf16.mxu0 %v1261_v7  ;;  %1136 = vmatprep.subr.bf16.mxu1 %v1261_v7 }
  0x70   : > { %1094 = vmatpush3.bf16.msra.mxu0 %v1261_v7  ;;  %1144 = vmatpush3.bf16.msra.mxu1 %v1261_v7 }
  0x71   : > { %1095 = vmatprep.subr.bf16.mxu0 %v1262_v8  ;;  %1137 = vmatprep.subr.bf16.mxu1 %v1262_v8 }
  0x74   : > { %1096 = vmatpush3.bf16.msra.mxu0 %v1262_v8  ;;  %1145 = vmatpush3.bf16.msra.mxu1 %v1262_v8 }
  0x75   : > { %1097 = vmatprep.subr.bf16.mxu0 %v1263_v9  ;;  %1138 = vmatprep.subr.bf16.mxu1 %v1263_v9 }
  0x78   : > { %1098 = vmatpush3.bf16.msra.mxu0 %v1263_v9  ;;  %1146 = vmatpush3.bf16.msra.mxu1 %v1263_v9 }
  0x7b   : > { %1100 = vmatmul.mubr.bf16.vlgmr.msra.gmra.mrb[0].mxu0 %v1266_v10  ;;  %1116 = vmatmul.mubr.bf16.vlgmr.msra.gmra.mrb[0].mxu1 %v1267_v11 }
  0x7c   : > { %1103 = vmatprep.mubr.bf16.mxu0 %v1268_v12  ;;  %1119 = vmatprep.mubr.bf16.mxu1 %v1269_v13 }
  0x83   : > { %1104 = vmatmul.mubr.bf16.gmra.mrb[4].mxu0 %v1270_v14  ;;  %1120 = vmatmul.mubr.bf16.gmra.mrb[4].mxu1 %v1271_v15 }
  0x84   : > { %1107 = vmatprep.mubr.bf16.mxu0 %v1272_v16  ;;  %1123 = vmatprep.mubr.bf16.mxu1 %v1273_v17 }
  0x8b   : > { %1108 = vmatmul.mubr.bf16.gmra.mrb[8].mxu0 %v1274_v18  ;;  %1124 = vmatmul.mubr.bf16.gmra.mrb[8].mxu1 %v1275_v19 }
  0x8c   : > { %1111 = vmatprep.mubr.bf16.mxu0 %v1276_v20  ;;  %1127 = vmatprep.mubr.bf16.mxu1 %v1277_v21 }
  0x93   : > { %1112 = vmatmul.mubr.bf16.gmra.mrb[12].mxu0 %v1278_v22  ;;  %1128 = vmatmul.mubr.bf16.gmra.mrb[12].mxu1 %v1279_v23 }
 0x14e   : > { %v1101_v25 = vpop.f32.mrb[0].mxu0  ;;  %v1117_v27 = vpop.f32.mrb[0].mxu1 }
 0x14f   : > { %v606_v28 = vmul.f32 %v1101_v25, %v1644_v24  ;;  %v622_v29 = vmul.f32 %v1117_v27, %v1644_v24  ;;  %v471_v30 = vpop.f32.mrb[1].mxu0  ;;  %v535_v31 = vpop.f32.mrb[1].mxu1 }
 0x150   : > { %v604_v32 = vmul.f32 %v1644_v24, %v471_v30  ;;  %v620_v33 = vmul.f32 %v1644_v24, %v535_v31  ;;  %v1102_v34 = vpop.f32.mrb[2].mxu0  ;;  %v1118_v35 = vpop.f32.mrb[2].mxu1 }
 0x151   : > { %v642_v36 = vadd.f32 %v1649_v26, %v606_v28  ;;  %v658_v37 = vadd.f32 %v1649_v26, %v622_v29  ;;  %v607_v38 = vmul.f32 %v1102_v34, %v1644_v24  ;;  %v623_v39 = vmul.f32 %v1118_v35, %v1644_v24  ;;  %v474_v40 = vpop.f32.mrb[3].mxu0  ;;  %v538_v41 = vpop.f32.mrb[3].mxu1 }
 0x152   : > { %v640_v42 = vadd.f32 %v1649_v26, %v604_v32  ;;  %v656_v43 = vadd.f32 %v1649_v26, %v620_v33  ;;  %v605_v44 = vmul.f32 %v1644_v24, %v474_v40  ;;  %v621_v45 = vmul.f32 %v1644_v24, %v538_v41 }
 0x153   : > { %v1149_v46 = vround.rtne.f32 %v642_v36  ;;  %v1165_v47 = vround.rtne.f32 %v658_v37  ;;  %v643_v48 = vadd.f32 %v1649_v26, %v607_v38  ;;  %v659_v49 = vadd.f32 %v1649_v26, %v623_v39 }
 0x154   : > { %v1147_v50 = vround.rtne.f32 %v640_v42  ;;  %v1163_v51 = vround.rtne.f32 %v656_v43  ;;  %v641_v52 = vadd.f32 %v1649_v26, %v605_v44  ;;  %v657_v53 = vadd.f32 %v1649_v26, %v621_v45 }
 0x155   : > { %v706_v54 = vmax.f32 %v1149_v46, 0.0  ;;  %v722_v55 = vmax.f32 %v1165_v47, 0.0  ;;  %v1150_v56 = vround.rtne.f32 %v643_v48  ;;  %v1166_v57 = vround.rtne.f32 %v659_v49 }
 0x156   : > { %v704_v58 = vmax.f32 %v1147_v50, 0.0  ;;  %v720_v59 = vmax.f32 %v1163_v51, 0.0  ;;  %v1148_v60 = vround.rtne.f32 %v641_v52  ;;  %v1164_v61 = vround.rtne.f32 %v657_v53  ;;  %v1105_v62 = vpop.f32.mrb[4].mxu0  ;;  %v1121_v63 = vpop.f32.mrb[4].mxu1 }
 0x157   : > { %v738_v0 = vmin.f32 %v706_v54, 127.0  ;;  %v754_v1 = vmin.f32 %v722_v55, 127.0  ;;  %v707_v2 = vmax.f32 %v1150_v56, 0.0  ;;  %v723_v3 = vmax.f32 %v1166_v57, 0.0  ;;  %v487_v4 = vpop.f32.mrb[5].mxu0  ;;  %v551_v5 = vpop.f32.mrb[5].mxu1 }
 0x158   : > { %v736_v6 = vmin.f32 %v704_v58, 127.0  ;;  %v752_v7 = vmin.f32 %v720_v59, 127.0  ;;  %v705_v8 = vmax.f32 %v1148_v60, 0.0  ;;  %v721_v9 = vmax.f32 %v1164_v61, 0.0  ;;  %v1106_v10 = vpop.f32.mrb[6].mxu0  ;;  %v1122_v11 = vpop.f32.mrb[6].mxu1 }
 0x159   : > { %v770_v12 = vtrunc.f32 %v738_v0  ;;  %v786_v13 = vtrunc.f32 %v754_v1  ;;  %v739_v14 = vmin.f32 %v707_v2, 127.0  ;;  %v755_v15 = vmin.f32 %v723_v3, 127.0  ;;  %v490_v16 = vpop.f32.mrb[7].mxu0  ;;  %v554_v17 = vpop.f32.mrb[7].mxu1 }
 0x15a   : > { %v768_v18 = vtrunc.f32 %v736_v6  ;;  %v784_v19 = vtrunc.f32 %v752_v7  ;;  %v737_v20 = vmin.f32 %v705_v8, 127.0  ;;  %v753_v21 = vmin.f32 %v721_v9, 127.0 }
 0x15b   : > { %v771_v22 = vtrunc.f32 %v739_v14  ;;  %v787_v23 = vtrunc.f32 %v755_v15  ;;  %v610_v25 = vmul.f32 %v1105_v62, %v1644_v24  ;;  %v626_v27 = vmul.f32 %v1121_v63, %v1644_v24 }
 0x15c   : > { %v769_v28 = vtrunc.f32 %v737_v20  ;;  %v785_v29 = vtrunc.f32 %v753_v21  ;;  %v608_v30 = vmul.f32 %v1644_v24, %v487_v4  ;;  %v624_v31 = vmul.f32 %v1644_v24, %v551_v5 }
 0x15d   : > { %v804_v32 = vpack.c.f32.eXmY %v770_v12, %v771_v22, 312  ;;  %v844_v33 = vpack.c.f32.eXmY %v786_v13, %v787_v23, 312  ;;  %v646_v34 = vadd.f32 %v1649_v26, %v610_v25  ;;  %v662_v35 = vadd.f32 %v1649_v26, %v626_v27 }
 0x15e   : > { %v800_v36 = vpack.c.f32.eXmY %v768_v18, %v769_v28, 312  ;;  %v840_v37 = vpack.c.f32.eXmY %v784_v19, %v785_v29, 312  ;;  %v644_v38 = vadd.f32 %v1649_v26, %v608_v30  ;;  %v660_v39 = vadd.f32 %v1649_v26, %v624_v31  ;;  %v1109_v40 = vpop.f32.mrb[8].mxu0  ;;  %v1125_v41 = vpop.f32.mrb[8].mxu1 }
 0x15f   : > { %v1153_v42 = vround.rtne.f32 %v646_v34  ;;  %v1169_v43 = vround.rtne.f32 %v662_v35  ;;  %v611_v44 = vmul.f32 %v1106_v10, %v1644_v24  ;;  %v627_v45 = vmul.f32 %v1122_v11, %v1644_v24  ;;  %v503_v46 = vpop.f32.mrb[9].mxu0  ;;  %v567_v47 = vpop.f32.mrb[9].mxu1 }
 0x160   : > { %v808_v48 = vpack.c.b8 %v804_v32, %v800_v36  ;;  %v848_v49 = vpack.c.b8 %v844_v33, %v840_v37  ;;  %v1151_v50 = vround.rtne.f32 %v644_v38  ;;  %v1167_v51 = vround.rtne.f32 %v660_v39  ;;  %v1678_v52 = vpop.f32.mrb[10].mxu0  ;;  %v1680_v53 = vpop.f32.mrb[10].mxu1 }
 0x161   : > { %v710_v54 = vmax.f32 %v1153_v42, 0.0  ;;  %v726_v55 = vmax.f32 %v1169_v43, 0.0  ;;  %v647_v56 = vadd.f32 %v1649_v26, %v611_v44  ;;  %v663_v57 = vadd.f32 %v1649_v26, %v627_v45  ;;  %v1684_v58 = vpop.f32.mrb[11].mxu0  ;;  %v1686_v59 = vpop.f32.mrb[11].mxu1 }
 0x162   : > { %880 = vst [vmem:[%s1690_s9] sm:$0xff] %v808_v48  ;;  %884 = vst [vmem:[%s1690_s9 + $0x20] sm:$0xff] %v848_v49  ;;  %v708_v60 = vmax.f32 %v1151_v50, 0.0  ;;  %v724_v61 = vmax.f32 %v1167_v51, 0.0  ;;  %v609_v62 = vmul.f32 %v1644_v24, %v490_v16  ;;  %v625_v63 = vmul.f32 %v1644_v24, %v554_v17 }
 0x163   : > { %v742_v0 = vmin.f32 %v710_v54, 127.0  ;;  %v758_v1 = vmin.f32 %v726_v55, 127.0  ;;  %v1154_v2 = vround.rtne.f32 %v647_v56  ;;  %v1170_v3 = vround.rtne.f32 %v663_v57 }
 0x164   : > { %v740_v4 = vmin.f32 %v708_v60, 127.0  ;;  %v756_v5 = vmin.f32 %v724_v61, 127.0  ;;  %v645_v6 = vadd.f32 %v1649_v26, %v609_v62  ;;  %v661_v7 = vadd.f32 %v1649_v26, %v625_v63 }
 0x165   : > { %v774_v8 = vtrunc.f32 %v742_v0  ;;  %v790_v9 = vtrunc.f32 %v758_v1  ;;  %v711_v10 = vmax.f32 %v1154_v2, 0.0  ;;  %v727_v11 = vmax.f32 %v1170_v3, 0.0 }
 0x166   : > { %v772_v12 = vtrunc.f32 %v740_v4  ;;  %v788_v13 = vtrunc.f32 %v756_v5  ;;  %v1152_v14 = vround.rtne.f32 %v645_v6  ;;  %v1168_v15 = vround.rtne.f32 %v661_v7  ;;  %v1113_v16 = vpop.f32.mrb[12].mxu0  ;;  %v1129_v17 = vpop.f32.mrb[12].mxu1 }
 0x167   : > { %v743_v18 = vmin.f32 %v711_v10, 127.0  ;;  %v759_v19 = vmin.f32 %v727_v11, 127.0  ;;  %v614_v20 = vmul.f32 %v1109_v40, %v1644_v24  ;;  %v630_v21 = vmul.f32 %v1125_v41, %v1644_v24  ;;  %v519_v22 = vpop.f32.mrb[13].mxu0  ;;  %v583_v23 = vpop.f32.mrb[13].mxu1 }
 0x168   : > { %v709_v25 = vmax.f32 %v1152_v14, 0.0  ;;  %v725_v27 = vmax.f32 %v1168_v15, 0.0  ;;  %v612_v28 = vmul.f32 %v1644_v24, %v503_v46  ;;  %v628_v29 = vmul.f32 %v1644_v24, %v567_v47  ;;  %v1702_v30 = vpop.f32.mrb[14].mxu0  ;;  %v1704_v31 = vpop.f32.mrb[14].mxu1 }
 0x169   : > { %v775_v32 = vtrunc.f32 %v743_v18  ;;  %v791_v33 = vtrunc.f32 %v759_v19  ;;  %v650_v34 = vadd.f32 %v1649_v26, %v614_v20  ;;  %v666_v35 = vadd.f32 %v1649_v26, %v630_v21  ;;  %v1708_v36 = vpop.f32.mrb[15].mxu0  ;;  %v1710_v37 = vpop.f32.mrb[15].mxu1 }
 0x16a   : > { %v741_v38 = vmin.f32 %v709_v25, 127.0  ;;  %v757_v39 = vmin.f32 %v725_v27, 127.0  ;;  %v648_v40 = vadd.f32 %v1649_v26, %v612_v28  ;;  %v664_v41 = vadd.f32 %v1649_v26, %v628_v29 }
 0x16b   : > { %v814_v42 = vpack.c.f32.eXmY %v774_v8, %v775_v32, 312  ;;  %v854_v43 = vpack.c.f32.eXmY %v790_v9, %v791_v33, 312  ;;  %v1157_v44 = vround.rtne.f32 %v650_v34  ;;  %v1173_v45 = vround.rtne.f32 %v666_v35 }
 0x16c   : > { %v773_v46 = vtrunc.f32 %v741_v38  ;;  %v789_v47 = vtrunc.f32 %v757_v39  ;;  %v1155_v48 = vround.rtne.f32 %v648_v40  ;;  %v1171_v49 = vround.rtne.f32 %v664_v41 }
 0x16d   : > { %v714_v50 = vmax.f32 %v1157_v44, 0.0  ;;  %v730_v51 = vmax.f32 %v1173_v45, 0.0  ;;  %v615_v54 = vmul.f32 %v1678_v52, %v1644_v24  ;;  %v631_v55 = vmul.f32 %v1680_v53, %v1644_v24 }
 0x16e   : > { %v810_v56 = vpack.c.f32.eXmY %v772_v12, %v773_v46, 312  ;;  %v850_v57 = vpack.c.f32.eXmY %v788_v13, %v789_v47, 312  ;;  %v712_v60 = vmax.f32 %v1155_v48, 0.0  ;;  %v728_v61 = vmax.f32 %v1171_v49, 0.0 }
 0x16f   : > { %v651_v62 = vadd.f32 %v1649_v26, %v615_v54  ;;  %v667_v63 = vadd.f32 %v1649_v26, %v631_v55  ;;  %v746_v2 = vmin.f32 %v714_v50, 127.0  ;;  %v762_v3 = vmin.f32 %v730_v51, 127.0 }
 0x170   : > { %v818_v0 = vpack.c.b8 %v814_v42, %v810_v56  ;;  %v858_v1 = vpack.c.b8 %v854_v43, %v850_v57  ;;  %v744_v52 = vmin.f32 %v712_v60, 127.0  ;;  %v760_v6 = vmin.f32 %v728_v61, 127.0 }
 0x171   : > { %v1158_v4 = vround.rtne.f32 %v651_v62  ;;  %v1174_v5 = vround.rtne.f32 %v667_v63  ;;  %v613_v53 = vmul.f32 %v1644_v24, %v1684_v58  ;;  %v629_v7 = vmul.f32 %v1644_v24, %v1686_v59 }
 0x172   : > { %881 = vst [vmem:[%s1690_s9 + $0x8] sm:$0xff] %v818_v0  ;;  %885 = vst [vmem:[%s1690_s9 + $0x28] sm:$0xff] %v858_v1  ;;  %v618_v10 = vmul.f32 %v1113_v16, %v1644_v24  ;;  %v634_v11 = vmul.f32 %v1129_v17, %v1644_v24  ;;  %v616_v14 = vmul.f32 %v1644_v24, %v519_v22  ;;  %v778_v25 = vtrunc.f32 %v746_v2 }
 0x173   : > { %v715_v8 = vmax.f32 %v1158_v4, 0.0  ;;  %v731_v9 = vmax.f32 %v1174_v5, 0.0  ;;  %v649_v12 = vadd.f32 %v1649_v26, %v613_v53  ;;  %v665_v13 = vadd.f32 %v1649_v26, %v629_v7 }
 0x174   : > { %v632_v15 = vmul.f32 %v1644_v24, %v583_v23  ;;  %v654_v58 = vadd.f32 %v1649_v26, %v618_v10  ;;  %v670_v59 = vadd.f32 %v1649_v26, %v634_v11  ;;  %v652_v16 = vadd.f32 %v1649_v26, %v616_v14 }
 0x175   : > { %v747_v18 = vmin.f32 %v715_v8, 127.0  ;;  %v763_v19 = vmin.f32 %v731_v9, 127.0  ;;  %v1156_v20 = vround.rtne.f32 %v649_v12  ;;  %v1172_v21 = vround.rtne.f32 %v665_v13 }
 0x176   : > { %v668_v17 = vadd.f32 %v1649_v26, %v632_v15  ;;  %v794_v27 = vtrunc.f32 %v762_v3  ;;  %v1161_v33 = vround.rtne.f32 %v654_v58  ;;  %v1177_v23 = vround.rtne.f32 %v670_v59 }
 0x177   : > { %v779_v28 = vtrunc.f32 %v747_v18  ;;  %v795_v29 = vtrunc.f32 %v763_v19  ;;  %v713_v32 = vmax.f32 %v1156_v20, 0.0  ;;  %v729_v22 = vmax.f32 %v1172_v21, 0.0 }
 0x178   : > { %v1159_v40 = vround.rtne.f32 %v652_v16  ;;  %v1175_v41 = vround.rtne.f32 %v668_v17  ;;  %v776_v42 = vtrunc.f32 %v744_v52  ;;  %v792_v43 = vtrunc.f32 %v760_v6 }
 0x179   : > { %v824_v34 = vpack.c.f32.eXmY %v778_v25, %v779_v28, 312  ;;  %v864_v35 = vpack.c.f32.eXmY %v794_v27, %v795_v29, 312  ;;  %v745_v38 = vmin.f32 %v713_v32, 127.0  ;;  %v761_v39 = vmin.f32 %v729_v22, 127.0 }
 0x17a   : > { %v619_v44 = vmul.f32 %v1702_v30, %v1644_v24  ;;  %v635_v45 = vmul.f32 %v1704_v31, %v1644_v24  ;;  %v718_v48 = vmax.f32 %v1161_v33, 0.0  ;;  %v734_v49 = vmax.f32 %v1177_v23, 0.0 }
 0x17b   : > { %v777_v46 = vtrunc.f32 %v745_v38  ;;  %v793_v47 = vtrunc.f32 %v761_v39  ;;  %v716_v56 = vmax.f32 %v1159_v40, 0.0  ;;  %v732_v57 = vmax.f32 %v1175_v41, 0.0 }
 0x17c   : > { %v655_v50 = vadd.f32 %v1649_v26, %v619_v44  ;;  %v671_v51 = vadd.f32 %v1649_v26, %v635_v45  ;;  %v617_v30 = vmul.f32 %v1644_v24, %v1708_v36  ;;  %v633_v31 = vmul.f32 %v1644_v24, %v1710_v37 }
 0x17d   : > { %v820_v54 = vpack.c.f32.eXmY %v776_v42, %v777_v46, 312  ;;  %v860_v55 = vpack.c.f32.eXmY %v792_v43, %v793_v47, 312  ;;  %v750_v0 = vmin.f32 %v718_v48, 127.0  ;;  %v766_v1 = vmin.f32 %v734_v49, 127.0 }
 0x17e   : > { %v1162_v60 = vround.rtne.f32 %v655_v50  ;;  %v1178_v61 = vround.rtne.f32 %v671_v51  ;;  %v653_v4 = vadd.f32 %v1649_v26, %v617_v30  ;;  %v669_v5 = vadd.f32 %v1649_v26, %v633_v31 }
 0x17f   : > { %v828_v62 = vpack.c.b8 %v824_v34, %v820_v54  ;;  %v868_v63 = vpack.c.b8 %v864_v35, %v860_v55  ;;  %v782_v36 = vtrunc.f32 %v750_v0  ;;  %v798_v8 = vtrunc.f32 %v766_v1 }
 0x180   : > { %v719_v2 = vmax.f32 %v1162_v60, 0.0  ;;  %v735_v3 = vmax.f32 %v1178_v61, 0.0  ;;  %v1160_v53 = vround.rtne.f32 %v653_v4  ;;  %v1176_v7 = vround.rtne.f32 %v669_v5 }
 0x181   : > { %882 = vst [vmem:[%s1690_s9 + $0x10] sm:$0xff] %v828_v62  ;;  %886 = vst [vmem:[%s1690_s9 + $0x30] sm:$0xff] %v868_v63  ;;  %v748_v24 = vmin.f32 %v716_v56, 127.0  ;;  %v764_v37 = vmin.f32 %v732_v57, 127.0 }
 0x182   : > { %v751_v52 = vmin.f32 %v719_v2, 127.0  ;;  %v767_v6 = vmin.f32 %v735_v3, 127.0  ;;  %v717_v11 = vmax.f32 %v1160_v53, 0.0  ;;  %v733_v12 = vmax.f32 %v1176_v7, 0.0 }
 0x183   : > { %v780_v18 = vtrunc.f32 %v748_v24  ;;  %v796_v19 = vtrunc.f32 %v764_v37 }
 0x184   : > { %v783_v9 = vtrunc.f32 %v751_v52  ;;  %v799_v10 = vtrunc.f32 %v767_v6  ;;  %v749_v26 = vmin.f32 %v717_v11, 127.0  ;;  %v765_v15 = vmin.f32 %v733_v12, 127.0 }
 0x186   : > { %v834_v13 = vpack.c.f32.eXmY %v782_v36, %v783_v9, 312  ;;  %v874_v14 = vpack.c.f32.eXmY %v798_v8, %v799_v10, 312  ;;  %v781_v58 = vtrunc.f32 %v749_v26  ;;  %v797_v59 = vtrunc.f32 %v765_v15 }
 0x188   : > { %v830_v20 = vpack.c.f32.eXmY %v780_v18, %v781_v58, 312  ;;  %v870_v21 = vpack.c.f32.eXmY %v796_v19, %v797_v59, 312 }
 0x18a   : > { %v838_v16 = vpack.c.b8 %v834_v13, %v830_v20  ;;  %v878_v17 = vpack.c.b8 %v874_v14, %v870_v21 }
 0x18c   : > { %883 = vst [vmem:[%s1690_s9 + $0x18] sm:$0xff] %v838_v16  ;;  %887 = vst [vmem:[%s1690_s9 + $0x38] sm:$0xff] %v878_v17 }
 0x18d   : > { %1351 = shalt.err (!%p1348_p5)
}
 0x18e   : > { %s1352_s8 = scalar_lea.hbm %s1755_s21, 1024  ;;  %s1356_s24 = scalar_lea.hbm %s1811_s3, 2048 }
 0x18f   : > { %p1353_p9 = scmp.ne.s32.totalorder %s1755_s21, %s1352_s8  ;;  %p1357_p3 = scmp.lt.u32.totalorder %s1755_s21, %s1811_s3 }
 0x190   : > { %p1358_p7 = scmp.lt.u32.totalorder %s1356_s24, %s1352_s8  ;;  %p1360_p4 = scmp.lt.u32.totalorder %s1352_s8, %s1755_s21 }
 0x191   : > { %p1354_p1 = pnand %p1353_p9, %p1552_p10 }
 0x192   : > { %p1359_p13 = por %p1358_p7, %p1357_p3 }
 0x193   : > { %p1355_p2 = pneg %p1354_p1 }
 0x194   : > { %p1361_p6 = por %p1360_p4, %p1359_p13 }
 0x196   : > { %p1362_p8 = pnand %p1361_p6, %p1355_p2 }
 0x198   : > { %1365 = shalt.err (!%p1362_p8)
}
 0x199   : > { %s1431_s9 = smov 128   ;;  %s1432_s18 = smov 8  }
 0x19a   : > { %1185 = dma.vmem_to_hbm [thread:$0]  (%p1552_p10), %s1757_s19, 1024, %s1755_s21, %s889_s4, %s1431_s9, %s1431_s9, %s1432_s18  }
 0x19b PF: > { %s918_s25 = sand.u32 1, %s1404_s12   ;;  %p1829_p12 = scmp.ne.s32.totalorder %s1819_s23, 0 }
 0x19c   : > { %p1830_p11 = scmp.ge.s32.totalorder %s1424_s17, 2  ;;  %s919_s26 = scalar_lea.sflag [#allocation4], %s918_s25 }
 0x19e   : > { %p1196_p0 = pnand %p1830_p11, %p1829_p12 }
 0x1a0   : > { %1399 = dma.done.wait (!%p1196_p0), %s919_s26, 1024  }
 0x1a1   : > { %1401 = vsyncadd (!%p1196_p0), %s919_s26, 4294966272  ;;  %s20_s17 = sadd.s32 1, %s1424_s17   ;;  %s1831_s12 = smov %s1408_s13 }
 0x1a2   : > { %p17_p5 = scmp.ge.s32.totalorder %s20_s17, 4   ;;  %s1832_s13 = smov %s1412_s14 }
 0x1a3   : > { %s1833_s14 = smov %s1561_s5  ;;  %s1834_s15 = smov %s1420_s16 }
 0x1a4   : > { %s1835_s16 = smov %s1837_s28  ;;  %19 = sbr.rel (!%p17_p5) target bundleno = 7 (0x7), region = 85 }
 0x1ab   :  { %924 = vsyncpa [#allocation3], 1 }
 0x1ac   :  { %926 = vsyncpa [#allocation3 + $0x1], 1 }
 0x1ad   :  { %927 = vsyncpa [#allocation6], 1 }
 0x1ae   :  { %928 = vsyncpa [#allocation4], 1 }
 0x1af   :  { %930 = vsyncpa [#allocation4 + $0x1], 1 }

</bundles_post_ra>
